<compile_context>
chip_gen: v7x
topology: tpu7x:2x2x1
jax: 0.10.0
libtpu: 0.0.40
codegen_flags: <defaults>
</compile_context>

<pallas_src>
import functools

import jax
import jax.numpy as jnp
from jax import lax
from jax.experimental import pallas as pl
from jax.experimental.pallas import tpu as pltpu


def _round_up(a, b):
    return (a + b - 1) // b * b


# -----------------------------------------------------------------------------
# Hardware-aware sizing.
# -----------------------------------------------------------------------------
def _tpu_limits():
    """Generation-aware VMEM / block sizing (v5e & v6e: 128 MiB, v7x: 64 MiB)."""
    vmem = 64 << 20
    try:
        info = pltpu.get_tpu_info()
        vmem = int(getattr(info, "vmem_capacity_bytes", vmem)) or vmem
    except Exception:
        pass
    if vmem >= (96 << 20):
        # v5e / v6e class: 128 MiB VMEM, single TensorCore per chip.
        return dict(vmem_cap=100 << 20, single_pass_max=22 << 20,
                    block_target=10 << 20, min_steps=2, two_core=False)
    # v7x class: 64 MiB VMEM per core, 2 TensorCores share the grid.
    return dict(vmem_cap=52 << 20, single_pass_max=6 << 20,
                block_target=4 << 20, min_steps=4, two_core=True)


def _vmem_limit(need_bytes, cap):
    return int(max(32 << 20, min(cap, need_bytes)))


def _pick_strip(tn, c, hw):
    """Lane-strip length (multiple of 128) keeping f32 temps around ~1 MiB."""
    target_elems = (1 << 20) // 4
    s = (target_elems // max(1, tn * c)) // 128 * 128
    s = int(max(512, min(4096, s)))
    return min(s, _round_up(hw, 128))


# -----------------------------------------------------------------------------
# Kernels.
# -----------------------------------------------------------------------------
def _gate_from_sqsum(sq_sum, params, epsilon):
    """sq_sum: (TN, C, 1) f32; params: (C, 3) f32 packed [alpha|gamma|beta]."""
    alpha = params[:, 0:1][None]                                   # (1, C, 1)
    gamma = params[:, 1:2][None]                                   # (1, C, 1)
    beta = params[:, 2:3][None]                                    # (1, C, 1)
    embedding = jnp.sqrt(sq_sum + epsilon) * alpha                 # (TN, C, 1)
    mean_sq = jnp.mean(embedding * embedding, axis=1, keepdims=True)
    norm = gamma * lax.rsqrt(mean_sq + epsilon)                    # (TN, C, 1)
    return 1.0 + jnp.tanh(embedding * norm + beta)                 # (TN, C, 1)


def _gct_single_pass_kernel(x_ref, p_ref, o_ref, *, epsilon, strip):
    # x_ref/o_ref: (TN, C, HW) with HW == full spatial extent (no HW edge).
    # A partial N edge block only produces garbage in rows that are dropped
    # on writeback; per-row computations never mix across rows.
    tn, c, hw = x_ref.shape
    nfull = hw // strip
    rem = hw - nfull * strip

    # --- per-channel sum of squares, strip-wise (bounds f32 temp VMEM) ------
    def sq_body(i, acc):
        start = pl.multiple_of(i * strip, strip)
        xs = x_ref[:, :, pl.ds(start, strip)].astype(jnp.float32)
        return acc + jnp.sum(xs * xs, axis=-1, keepdims=True)

    sq = jnp.zeros((tn, c, 1), jnp.float32)
    if nfull > 0:
        sq = lax.fori_loop(0, nfull, sq_body, sq, unroll=nfull <= 8)
    if rem > 0:
        xs = x_ref[:, :, nfull * strip:hw].astype(jnp.float32)
        sq = sq + jnp.sum(xs * xs, axis=-1, keepdims=True)

    gate = _gate_from_sqsum(sq, p_ref[...], epsilon)               # (TN, C, 1)

    # --- apply gate, strip-wise ---------------------------------------------
    def st_body(i, carry):
        start = pl.multiple_of(i * strip, strip)
        xs = x_ref[:, :, pl.ds(start, strip)].astype(jnp.float32)
        o_ref[:, :, pl.ds(start, strip)] = (xs * gate).astype(o_ref.dtype)
        return carry

    if nfull > 0:
        lax.fori_loop(0, nfull, st_body, 0, unroll=nfull <= 8)
    if rem > 0:
        xs = x_ref[:, :, nfull * strip:hw].astype(jnp.float32)
        o_ref[:, :, nfull * strip:hw] = (xs * gate).astype(o_ref.dtype)


def _gct_sqsum_kernel(x_ref, sq_ref, *, hw_total, thw):
    # grid = (N, n_split, n_hw_per_split); reduction ("arbitrary") axis last.
    s = pl.program_id(1)
    h = pl.program_id(2)
    n_hw_g = pl.num_programs(2)

    @pl.when(h == 0)
    def _():
        sq_ref[...] = jnp.zeros_like(sq_ref)

    base = (s * n_hw_g + h) * thw                                  # global lane offset
    xf = x_ref[...].astype(jnp.float32)                            # (1, C, thw)
    lane = lax.broadcasted_iota(jnp.int32, xf.shape, 2)
    xf = jnp.where(lane + base < hw_total, xf, 0.0)                # mask HW tail
    part = jnp.sum(xf * xf, axis=-1, keepdims=True)                # (1, C, 1)
    sq_ref[...] += part[:, None]                                   # (1, 1, C, 1)


def _gct_apply_kernel(x_ref, g_ref, o_ref):
    xf = x_ref[...].astype(jnp.float32)                            # (1, C, thw)
    o_ref[...] = (xf * g_ref[...]).astype(o_ref.dtype)             # OOB lanes dropped


# -----------------------------------------------------------------------------
# Wrapper.
# -----------------------------------------------------------------------------
def gct_forward(x_nchw, alpha, gamma, beta, epsilon=1e-5, *,
                block_bytes_target=None, single_pass_max_bytes=None,
                stats_split=None):
    """GCT forward. x_nchw: (N, C, H, W); alpha/gamma/beta: (1, C, 1, 1)."""
    N, C, H, W = x_nchw.shape
    HW = H * W
    dtype = x_nchw.dtype
    itemsize = jnp.dtype(dtype).itemsize

    limits = _tpu_limits()
    block_target = (block_bytes_target if block_bytes_target is not None
                    else limits["block_target"])
    single_pass_max = (single_pass_max_bytes if single_pass_max_bytes is not None
                       else limits["single_pass_max"])
    vmem_cap = limits["vmem_cap"]
    min_steps = limits["min_steps"]

    # VMEM footprint of one image's (C, HW) slab incl. sublane/lane tile padding.
    c_pad = _round_up(C, 8 * max(1, 4 // itemsize))
    hw_pad = _round_up(HW, 128)
    slab_bytes = c_pad * hw_pad * itemsize

    # (N, C, H, W) -> (N, C, HW) is a free, contiguous reshape (no HBM copy).
    x3 = x_nchw.reshape(N, C, HW)

    alpha_c = alpha.reshape(C).astype(jnp.float32)
    gamma_c = gamma.reshape(C).astype(jnp.float32)
    beta_c = beta.reshape(C).astype(jnp.float32)

    if slab_bytes <= single_pass_max:
        # ------------------ single pass: whole image(s) per block -----------
        params = jnp.stack([alpha_c, gamma_c, beta_c], axis=1)     # (C, 3)

        tn = int(max(1, min(N, block_target // max(1, slab_bytes))))
        # Keep >= min_steps grid steps (v7x: 2 TCs each need >= 2 steps for
        # double-buffering) while blocks stay >= 512 KiB.
        cand = max(1, -(-N // min_steps))
        if cand < tn and cand * slab_bytes >= (512 << 10):
            tn = cand

        strip = _pick_strip(tn, C, HW)
        block_bytes = tn * slab_bytes
        need = 4 * block_bytes + (6 << 20)          # dbl-buffered in+out + temps

        out3 = pl.pallas_call(
            functools.partial(_gct_single_pass_kernel,
                              epsilon=float(epsilon), strip=strip),
            out_shape=jax.ShapeDtypeStruct((N, C, HW), dtype),
            grid_spec=pltpu.PrefetchScalarGridSpec(
                num_scalar_prefetch=0,
                grid=(pl.cdiv(N, tn),),
                in_specs=[
                    pl.BlockSpec((tn, C, HW), lambda n: (n, 0, 0)),
                    pl.BlockSpec((C, 3), lambda n: (0, 0)),
                ],
                out_specs=pl.BlockSpec((tn, C, HW), lambda n: (n, 0, 0)),
            ),
            compiler_params=pltpu.CompilerParams(
                dimension_semantics=("parallel",),
                vmem_limit_bytes=_vmem_limit(need, vmem_cap),
            ),
        )(x3, params)
        return out3.reshape(N, C, H, W)

    # ---------- two-pass fallback for oversized per-image (C, HW) slabs -----
    thw = max(512, (block_target // max(1, c_pad * itemsize)) // 128 * 128)
    thw = int(min(thw, hw_pad))
    n_hw = pl.cdiv(HW, thw)

    # Split the HW reduction across a leading parallel axis so both TensorCores
    # of a v7x-class part work on the stats pass when there is a single image.
    if stats_split is not None:
        n_split = int(stats_split)
    elif limits["two_core"] and N == 1 and n_hw >= 4:
        n_split = 2
    else:
        n_split = 1
    if n_split < 1 or (n_hw % n_split) != 0:
        n_split = 1
    n_hw_g = n_hw // n_split

    block_bytes = c_pad * thw * itemsize
    block_f32 = c_pad * thw * 4

    sq_parts = pl.pallas_call(
        functools.partial(_gct_sqsum_kernel, hw_total=HW, thw=thw),
        out_shape=jax.ShapeDtypeStruct((N, n_split, C, 1), jnp.float32),
        grid_spec=pltpu.PrefetchScalarGridSpec(
            num_scalar_prefetch=0,
            grid=(N, n_split, n_hw_g),
            in_specs=[pl.BlockSpec((1, C, thw),
                                   lambda n, s, h: (n, 0, s * n_hw_g + h))],
            out_specs=pl.BlockSpec((1, 1, C, 1), lambda n, s, h: (n, s, 0, 0)),
        ),
        compiler_params=pltpu.CompilerParams(
            dimension_semantics=("parallel", "parallel", "arbitrary"),
            vmem_limit_bytes=_vmem_limit(
                2 * block_bytes + 2 * block_f32 + (4 << 20), vmem_cap),
        ),
    )(x3)

    # Tiny per-image gate, computed once between the passes (plain JAX).
    sq = jnp.sum(sq_parts[..., 0], axis=1)                         # (N, C)
    emb = jnp.sqrt(sq + epsilon) * alpha_c[None, :]                # (N, C)
    mean_sq = jnp.mean(emb * emb, axis=1, keepdims=True)           # (N, 1)
    norm = gamma_c[None, :] * lax.rsqrt(mean_sq + epsilon)         # (N, C)
    gate = (1.0 + jnp.tanh(emb * norm + beta_c[None, :]))[:, :, None]  # (N, C, 1)

    out3 = pl.pallas_call(
        _gct_apply_kernel,
        out_shape=jax.ShapeDtypeStruct((N, C, HW), dtype),
        grid_spec=pltpu.PrefetchScalarGridSpec(
            num_scalar_prefetch=0,
            grid=(N, n_hw),
            in_specs=[
                pl.BlockSpec((1, C, thw), lambda n, h: (n, 0, h)),
                pl.BlockSpec((1, C, 1), lambda n, h: (n, 0, 0)),
            ],
            out_specs=pl.BlockSpec((1, C, thw), lambda n, h: (n, 0, h)),
        ),
        compiler_params=pltpu.CompilerParams(
            dimension_semantics=("parallel", "parallel"),
            vmem_limit_bytes=_vmem_limit(
                4 * block_bytes + block_f32 + (4 << 20), vmem_cap),
        ),
    )(x3, gate)
    return out3.reshape(N, C, H, W)


# -----------------------------------------------------------------------------
# Reference + tests.
# -----------------------------------------------------------------------------
def gct_reference(x, alpha, gamma, beta, epsilon=1e-5):
    """Pure-JAX reference mirroring the PyTorch forward exactly (f32 math)."""
    xf = x.astype(jnp.float32)
    embedding = jnp.sqrt(jnp.sum(xf ** 2, axis=(2, 3), keepdims=True) + epsilon) * alpha
    norm = gamma / jnp.sqrt(jnp.mean(embedding ** 2, axis=1, keepdims=True) + epsilon)
    gate = 1.0 + jnp.tanh(embedding * norm + beta)
    return (xf * gate).astype(x.dtype)


def _make_inputs(key, n, c, h, w):
    kx, ka, kg, kb = jax.random.split(key, 4)
    x = jax.random.normal(kx, (n, c, h, w), dtype=jnp.float32)
    alpha = jnp.ones((1, c, 1, 1), jnp.float32) + 0.1 * jax.random.normal(ka, (1, c, 1, 1))
    gamma = 0.1 * jax.random.normal(kg, (1, c, 1, 1), dtype=jnp.float32)
    beta = 0.1 * jax.random.normal(kb, (1, c, 1, 1), dtype=jnp.float32)
    return x, alpha, gamma, beta


if __name__ == "__main__":
    key = jax.random.PRNGKey(0)
    ks = jax.random.split(key, 6)

    def check(x, a, g, b, atol, rtol, **kw):
        out = jax.block_until_ready(gct_forward(x, a, g, b, **kw))
        ref = gct_reference(x, a, g, b)
        assert out.shape == x.shape and out.dtype == x.dtype
        ok = jnp.allclose(out.astype(jnp.float32), ref.astype(jnp.float32),
                          atol=atol, rtol=rtol)
        assert ok, f"mismatch for shape {x.shape} dtype {x.dtype}"

    # 1) Primary small test: single-pass path, lane-aligned HW.
    x, a, g, b = _make_inputs(ks[0], 2, 4, 16, 16)
    check(x, a, g, b, 1e-4, 1e-4)

    # 2) HW not a multiple of 128 + partial N edge block (tn=2 over N=3).
    x, a, g, b = _make_inputs(ks[1], 3, 4, 10, 10)
    check(x, a, g, b, 1e-4, 1e-4, block_bytes_target=8192)

    # 3) Exercise the strip loops (full 4096-lane strip + lane remainder).
    x, a, g, b = _make_inputs(ks[2], 2, 4, 64, 65)
    check(x, a, g, b, 1e-4, 1e-4)

    # 4) Forced two-pass path: multiple HW tiles with a masked partial tail.
    x, a, g, b = _make_inputs(ks[3], 2, 8, 30, 30)
    check(x, a, g, b, 1e-4, 1e-4, block_bytes_target=4096, single_pass_max_bytes=0)

    # 5) Two-pass with the stats reduction split across a parallel axis
    #    (v7x dual-TensorCore path), forced on for coverage.
    x, a, g, b = _make_inputs(ks[4], 1, 8, 64, 64)
    check(x, a, g, b, 1e-4, 1e-4, block_bytes_target=4096,
          single_pass_max_bytes=0, stats_split=2)

    # 6) bf16 input (gate computed in f32, product cast once to bf16).
    x, a, g, b = _make_inputs(ks[5], 2, 4, 16, 16)
    check(x.astype(jnp.bfloat16), a, g, b, 5e-2, 5e-2)

    print("KERNEL_OK")
</pallas_src>

<mosaic_0001>
module attributes {stable_mosaic.version = 11 : i64} {
  func.func @_gct_single_pass_kernel(%arg0: i32, %arg1: memref<2x4x256xf32, #tpu.memory_space<vmem>>, %arg2: memref<4x3xf32, #tpu.memory_space<vmem>>, %arg3: memref<2x4x256xf32, #tpu.memory_space<vmem>>) attributes {dimension_semantics = [#tpu.dimension_semantics<parallel>], iteration_bounds = array<i64: 1>, scalar_prefetch = 0 : i64, scratch_operands = 0 : i64, tpu.core_type = #tpu.core_type<tc>, window_params = [{transform_indices = @transform_0, window_bounds = array<i64: 2, 4, 256>}, {pipeline_mode = #tpu.pipeline_mode<synchronous>, transform_indices = @transform_1, window_bounds = array<i64: 4, 3>}, {transform_indices = @transform_2, window_bounds = array<i64: 2, 4, 256>}]} {
    %cst = arith.constant 0.000000e+00 : f32
    %0 = vector.broadcast %cst : f32 to vector<2x4x1xf32>
    %c0_i32 = arith.constant 0 : i32
    %c256_i32 = arith.constant 256 : i32
    %1 = arith.muli %c0_i32, %c256_i32 : i32
    %2 = tpu.assume_multiple %1, 256 : i32
    %c0 = arith.constant 0 : index
    %c0_0 = arith.constant 0 : index
    %3 = arith.index_cast %2 : i32 to index
    %4 = vector.load %arg1[%c0, %c0_0, %3] : memref<2x4x256xf32, #tpu.memory_space<vmem>>, vector<2x4x256xf32>
    %5 = arith.mulf %4, %4 : vector<2x4x256xf32>
    %cst_1 = arith.constant dense<0.000000e+00> : vector<2x4xf32>
    %6 = vector.multi_reduction <add>, %5, %cst_1 [2] : vector<2x4x256xf32> to vector<2x4xf32>
    %7 = vector.shape_cast %6 : vector<2x4xf32> to vector<2x4x1xf32>
    %8 = arith.addf %0, %7 : vector<2x4x1xf32>
    %c1_i32 = arith.constant 1 : i32
    %c0_2 = arith.constant 0 : index
    %c0_3 = arith.constant 0 : index
    %9 = vector.load %arg2[%c0_2, %c0_3] : memref<4x3xf32, #tpu.memory_space<vmem>>, vector<4x3xf32>
    %10 = vector.extract_strided_slice %9 {offsets = [0, 0], sizes = [4, 1], strides = [1, 1]} : vector<4x3xf32> to vector<4x1xf32>
    %11 = vector.shape_cast %10 : vector<4x1xf32> to vector<1x4x1xf32>
    %12 = vector.extract_strided_slice %9 {offsets = [0, 1], sizes = [4, 1], strides = [1, 1]} : vector<4x3xf32> to vector<4x1xf32>
    %13 = vector.shape_cast %12 : vector<4x1xf32> to vector<1x4x1xf32>
    %14 = vector.extract_strided_slice %9 {offsets = [0, 2], sizes = [4, 1], strides = [1, 1]} : vector<4x3xf32> to vector<4x1xf32>
    %15 = vector.shape_cast %14 : vector<4x1xf32> to vector<1x4x1xf32>
    %cst_4 = arith.constant 9.99999974E-6 : f32
    %16 = vector.broadcast %cst_4 : f32 to vector<2x4x1xf32>
    %17 = arith.addf %8, %16 : vector<2x4x1xf32>
    %18 = math.sqrt %17 : vector<2x4x1xf32>
    %19 = vector.broadcast %11 : vector<1x4x1xf32> to vector<2x4x1xf32>
    %20 = arith.mulf %18, %19 : vector<2x4x1xf32>
    %21 = arith.mulf %20, %20 : vector<2x4x1xf32>
    %cst_5 = arith.constant dense<0.000000e+00> : vector<2x1xf32>
    %22 = vector.multi_reduction <add>, %21, %cst_5 [1] : vector<2x4x1xf32> to vector<2x1xf32>
    %23 = vector.shape_cast %22 : vector<2x1xf32> to vector<2x1x1xf32>
    %cst_6 = arith.constant 4.000000e+00 : f32
    %24 = vector.broadcast %cst_6 : f32 to vector<2x1x1xf32>
    %25 = arith.divf %23, %24 : vector<2x1x1xf32>
    %cst_7 = arith.constant 9.99999974E-6 : f32
    %26 = vector.broadcast %cst_7 : f32 to vector<2x1x1xf32>
    %27 = arith.addf %25, %26 : vector<2x1x1xf32>
    %28 = math.rsqrt %27 : vector<2x1x1xf32>
    %29 = vector.broadcast %13 : vector<1x4x1xf32> to vector<2x4x1xf32>
    %30 = vector.broadcast %28 : vector<2x1x1xf32> to vector<2x4x1xf32>
    %31 = arith.mulf %29, %30 : vector<2x4x1xf32>
    %32 = arith.mulf %20, %31 : vector<2x4x1xf32>
    %33 = vector.broadcast %15 : vector<1x4x1xf32> to vector<2x4x1xf32>
    %34 = arith.addf %32, %33 : vector<2x4x1xf32>
    %35 = math.tanh %34 : vector<2x4x1xf32>
    %cst_8 = arith.constant 1.000000e+00 : f32
    %36 = vector.broadcast %cst_8 : f32 to vector<2x4x1xf32>
    %37 = arith.addf %36, %35 : vector<2x4x1xf32>
    %c0_i32_9 = arith.constant 0 : i32
    %c256_i32_10 = arith.constant 256 : i32
    %38 = arith.muli %c0_i32_9, %c256_i32_10 : i32
    %39 = tpu.assume_multiple %38, 256 : i32
    %c0_11 = arith.constant 0 : index
    %c0_12 = arith.constant 0 : index
    %40 = arith.index_cast %39 : i32 to index
    %41 = vector.load %arg1[%c0_11, %c0_12, %40] : memref<2x4x256xf32, #tpu.memory_space<vmem>>, vector<2x4x256xf32>
    %42 = vector.broadcast %37 : vector<2x4x1xf32> to vector<2x4x256xf32>
    %43 = arith.mulf %41, %42 : vector<2x4x256xf32>
    %c0_13 = arith.constant 0 : index
    %c0_14 = arith.constant 0 : index
    %44 = arith.index_cast %39 : i32 to index
    %45 = vector.load %arg3[%c0_13, %c0_14, %44] : memref<2x4x256xf32, #tpu.memory_space<vmem>>, vector<2x4x256xf32>
    tpu.vector_store %arg3[%c0_13, %c0_14, %44], %43 {strides = array<i32>} : memref<2x4x256xf32, #tpu.memory_space<vmem>>, vector<2x4x256xf32>,
    %c1_i32_15 = arith.constant 1 : i32
    return
  }
  func.func @transform_0(%arg0: i32) -> (i32, i32, i32) {
    %c0_i32 = arith.constant 0 : i32
    %c0_i32_0 = arith.constant 0 : i32
    %c0_i32_1 = arith.constant 0 : i32
    return %arg0, %c0_i32, %c0_i32_0 : i32, i32, i32
  }
  func.func @transform_1(%arg0: i32) -> (i32, i32) {
    %c0_i32 = arith.constant 0 : i32
    %c0_i32_0 = arith.constant 0 : i32
    %c0_i32_1 = arith.constant 0 : i32
    return %c0_i32, %c0_i32_0 : i32, i32
  }
  func.func @transform_2(%arg0: i32) -> (i32, i32, i32) {
    %c0_i32 = arith.constant 0 : i32
    %c0_i32_0 = arith.constant 0 : i32
    %c0_i32_1 = arith.constant 0 : i32
    return %arg0, %c0_i32, %c0_i32_0 : i32, i32, i32
  }
}

</mosaic_0001>

<bundles_post_ra>
// kernel: tpu_custom_call.1
= control target key start
LH: loop header
LB: loop body
LE: loop exit
PB: predicated region body
PF: predicated region fallthrough
CT: control target
= control target key end

     0   :  { %7 = vsyncpa [#allocation3], 0  ;;  %s353_s0 = inlined_call_operand.hbm [shape: f32[2,4,256], index: 0, kind: input, shape index: {}]   ;;  %s354_s1 = inlined_call_operand.hbm [shape: f32[4,3], index: 1, kind: input, shape index: {}]   ;;  %s355_s2 = inlined_call_operand.hbm [shape: f32[2,4,256], index: 2, kind: output, shape index: {}]  }
   0x1   :  { %8 = vsyncpa [#allocation6], 0 }
   0x2   :  { %9 = vsyncpa [#allocation4], 0  ;;  %s276_s9 = smov [#allocation2]   ;;  %s204_s13 = scalar_lea.hbm %s353_s0, 256 }
   0x3   :  { %s15_s10 = sshll.u32 %s276_s9, 4  ;;  %p205_p0 = scmp.ne.s32.totalorder %s353_s0, %s204_s13  ;;  %s16_s10 = int_to_ptr.vmem [resolvable:$true] %s15_s10 }
   0x4   :  { %p208_p1 = scmp.lt.u32.totalorder %s204_s13, %s353_s0 }
   0x6   :  { %p210_p2 = pnand %p208_p1, %p205_p0 }
   0x8   :  { %213 = shalt.err (!%p210_p2)
}
   0x9   :  { %s214_s18 = scalar_lea.vmem %s16_s10, 256  ;;  %p219_p4 = scmp.lt.s32.totalorder %s16_s10, %s16_s10 }
   0xa   :  { %p215_p3 = scmp.ne.s32.totalorder %s16_s10, %s214_s18  ;;  %p220_p5 = scmp.lt.s32.totalorder %s214_s18, %s214_s18 }
   0xc   :  { %p221_p6 = por %p220_p5, %p219_p4 }
   0xe   :  { %p222_p7 = pnand %p221_p6, %p215_p3 }
  0x10   :  { %225 = shalt.err (!%p222_p7)
}
  0x11   :  { %s277_s19 = smov 128   ;;  %s278_s20 = smov 8  }
  0x12   :  { %21 = dma.hbm_to_vmem [thread:$0]  %s353_s0, 256, %s16_s10, [#allocation3], %s277_s19, %s277_s19, %s278_s20  }
  0x13   :  { %s279_s23 = smov [#allocation5]   ;;  %s226_s27 = scalar_lea.hbm %s354_s1, 64 }
  0x14   :  { %s28_s24 = sshll.u32 %s279_s23, 4  ;;  %p227_p8 = scmp.ne.s32.totalorder %s354_s1, %s226_s27  ;;  %s29_s24 = int_to_ptr.vmem [resolvable:$true] %s28_s24 }
  0x15   :  { %p230_p9 = scmp.lt.u32.totalorder %s226_s27, %s354_s1 }
  0x17   :  { %p232_p10 = pnand %p230_p9, %p227_p8 }
  0x19   :  { %235 = shalt.err (!%p232_p10)
}
  0x1a   :  { %s236_s4 = scalar_lea.vmem %s29_s24, 64  ;;  %p241_p12 = scmp.lt.s32.totalorder %s29_s24, %s29_s24 }
  0x1b   :  { %p237_p11 = scmp.ne.s32.totalorder %s29_s24, %s236_s4  ;;  %p242_p13 = scmp.lt.s32.totalorder %s236_s4, %s236_s4 }
  0x1d   :  { %p243_p0 = por %p242_p13, %p241_p12 }
  0x1f   :  { %p244_p1 = pnand %p243_p0, %p237_p11 }
  0x21   :  { %247 = shalt.err (!%p244_p1)
}
  0x22   :  { %31 = dma.hbm_to_vmem [thread:$0]  %s354_s1, 64, %s29_s24, [#allocation6]  }
  0x23   :  { %270 = dma.done.wait [#allocation3], 256  }
  0x24   :  { %271 = vsyncadd [#allocation3], 4294967040 }
  0x25   :  { %272 = dma.done.wait [#allocation6], 64  }
  0x26   :  { %273 = vsyncadd [#allocation6], 4294967232  ;;  %v328_v0 = vld [vmem:[#allocation2] sm:$0xff]  ;;  %vm48_vm0 = vcmask 1043456   ;;  %v330_v1 = vld [vmem:[#allocation2 + $0x8] sm:$0xff]  ;;  %vm82_vm4 = vcmask 3072  }
  0x27   :  { %v40_v2 = vmul.f32 %v328_v0, %v328_v0  ;;  %v41_v3 = vmul.f32 %v330_v1, %v330_v1  ;;  %v61_v19 = vld [vmem:[#allocation5] sm:$0xf]  ;;  %s280_s1 = smov 1   ;;  %v281_v53 = vmov 0   ;;  %s282_s6 = smov 127  }
  0x28   :  { %190 = vset.pattern.permute.xlu1 %v281_v53  ;;  %191 = vset.pattern.permute.xlu0 %v281_v53  ;;  %s283_s7 = smov 126   ;;  %s285_s8 = smov [#allocation7]  }
  0x29   :  { %v44_v4 = vcombine.high %v40_v2, %v40_v2  ;;  %v49_v5 = vsel %vm48_vm0, %v40_v2, 0.0  ;;  %v45_v6 = vcombine.high %v41_v3, %v41_v3  ;;  %v54_v8 = vsel %vm48_vm0, %v41_v3, 0.0  ;;  %s167_s9 = sshll.u32 %s285_s8, 4  ;;  %s168_s9 = int_to_ptr.vmem [resolvable:$true] %s167_s9 }
  0x2a   :  { %s248_s10 = scalar_lea.vmem %s168_s9, 256  ;;  %p253_p3 = scmp.lt.s32.totalorder %s168_s9, %s168_s9 }
  0x2b   :  { %v50_v7 = vsel %vm48_vm0, %v44_v4, 0.0  ;;  %v55_v9 = vsel %vm48_vm0, %v45_v6, 0.0  ;;  %p249_p2 = scmp.ne.s32.totalorder %s168_s9, %s248_s10  ;;  %p254_p4 = scmp.lt.s32.totalorder %s248_s10, %s248_s10 }
  0x2c   :  { %v51_v10 = vadd.f32 %v50_v7, %v49_v5  ;;  %v56_v11 = vadd.f32 %v55_v9, %v54_v8  ;;  %v284_v5 = vmov 839922192   ;;  %v145_v7 = vlaneseq }
  0x2d   :  { %v143_v6 = vunpack.c.l.s4 %v284_v5  ;;  %p255_p5 = por %p254_p4, %p253_p3 }
  0x2e   :  { %52 = vadd.xlane.f32.xlu0 %v51_v10  ;;  %v146_v9 = vshrl.u32 %v145_v7, 7 }
  0x2f   :  { %v144_v8 = vunpack.c.0.s8 %v143_v6  ;;  %p256_p6 = pnand %p255_p5, %p249_p2 }
  0x31   :  { %v147_v10 = vsub.s32 %v144_v8, %v146_v9 }
  0x32   :  { %57 = vadd.xlane.f32.xlu0 %v56_v11 }
  0xbb   :  { %v53_v12 = vpop.xlane.xlu0 %52 }
  0xbc   :  { %v62_v13 = vadd.f32 1e-05, %v53_v12 }
  0xbe   :  { %192 = vrsqrt.f32 %v62_v13  ;;  %vm66_vm1 = vcmp.eq.f32.partialorder %v62_v13, inf  ;;  %v69_v18 = vand.u32 2147483648, %v62_v13  ;;  %vm68_vm2 = vcmp.eq.f32.partialorder %v62_v13, 0.0 }
  0xbf   :  { %v58_v14 = vpop.xlane.xlu0 %57 }
  0xc0   :  { %v63_v15 = vadd.f32 1e-05, %v58_v14 }
  0xc2   :  { %194 = vrsqrt.f32 %v63_v15  ;;  %vm73_vm3 = vcmp.eq.f32.partialorder %v63_v15, inf  ;;  %v76_v25 = vand.u32 2147483648, %v63_v15  ;;  %vm75_vm5 = vcmp.eq.f32.partialorder %v63_v15, 0.0 }
  0xc8   :  { %v193_v16 = vpop.eup %192 }
  0xc9   :  { %v65_v17 = vmul.f32 %v193_v16, %v62_v13 }
  0xcb   :  { %v67_v20 = vsel %vm66_vm1, %v62_v13, %v65_v17 }
  0xcc   :  { %v195_v21 = vpop.eup %194  ;;  %v70_v22 = vsel %vm68_vm2, %v69_v18, %v67_v20 }
  0xcd   :  { %v72_v23 = vmul.f32 %v195_v21, %v63_v15  ;;  %v78_v24 = vmul.f32 %v70_v22, %v61_v19 }
  0xcf   :  { %v74_v26 = vsel %vm73_vm3, %v63_v15, %v72_v23  ;;  %v80_v27 = vmul.f32 %v78_v24, %v78_v24 }
  0xd0   :  { %v77_v28 = vsel %vm75_vm5, %v76_v25, %v74_v26 }
  0xd1   :  { %v79_v29 = vmul.f32 %v77_v28, %v61_v19  ;;  %v83_v30 = vsel %vm82_vm4, %v80_v27, 0.0 }
  0xd2   :  { %v84_v31 = vrot.slane %v83_v30, 4 }
  0xd3   :  { %v81_v32 = vmul.f32 %v79_v29, %v79_v29 }
  0xd4   :  { %v85_v33 = vadd.f32 %v84_v31, %v83_v30 }
  0xd5   :  { %v90_v34 = vsel %vm82_vm4, %v81_v32, 0.0 }
  0xd6   :  { %v86_v35 = vrot.slane %v85_v33, 2  ;;  %v91_v36 = vrot.slane %v90_v34, 4 }
  0xd8   :  { %v87_v37 = vadd.f32 %v86_v35, %v85_v33  ;;  %v92_v38 = vadd.f32 %v91_v36, %v90_v34 }
  0xda   :  { %v88_v39 = vrot.slane %v87_v37, 1  ;;  %v93_v40 = vrot.slane %v92_v38, 2 }
  0xdc   :  { %v89_v41 = vadd.f32 %v88_v39, %v87_v37  ;;  %v94_v42 = vadd.f32 %v93_v40, %v92_v38 }
  0xde   :  { %v98_v43 = vmul.f32 0.25, %v89_v41  ;;  %v95_v44 = vrot.slane %v94_v42, 1 }
  0xe0   :  { %v100_v45 = vadd.f32 1e-05, %v98_v43  ;;  %v96_v46 = vadd.f32 %v95_v44, %v94_v42 }
  0xe2   :  { %196 = vrsqrt.f32 %v100_v45  ;;  %v99_v47 = vmul.f32 0.25, %v96_v46 }
  0xe4   :  { %v101_v48 = vadd.f32 1e-05, %v99_v47 }
  0xe6   :  { %198 = vrsqrt.f32 %v101_v48 }
  0xec   :  { %v197_v49 = vpop.eup %196 }
  0xed   :  { %106 = vrot.lane.b32.xlu1 %v197_v49, %s280_s1 }
  0xf0   :  { %v199_v50 = vpop.eup %198 }
  0xf1   :  { %108 = vrot.lane.b32.xlu1 %v199_v50, %s280_s1 }
 0x15f   :  { %v107_v51 = vpop.permute.xlu1 %106 }
 0x160   :  { %v112_v52 = vmul.f32 %v107_v51, %v61_v19 }
 0x162   :  { %116 = vrot.lane.b32.xlu0 %v112_v52, %s282_s6 }
 0x163   :  { %v109_v54 = vpop.permute.xlu1 %108 }
 0x164   :  { %v113_v55 = vmul.f32 %v109_v54, %v61_v19 }
 0x166   :  { %118 = vrot.lane.b32.xlu1 %v113_v55, %s282_s6 }
 0x16a   :  { %125 = vrot.lane.b32.xlu1 %v61_v19, %s283_s7 }
 0x1d4   :  { %v117_v56 = vpop.permute.xlu0 %116 }
 0x1d5   :  { %v122_v58 = vmul.f32 %v117_v56, %v78_v24 }
 0x1d8   :  { %v119_v57 = vpop.permute.xlu1 %118 }
 0x1d9   :  { %v123_v59 = vmul.f32 %v119_v57, %v79_v29 }
 0x1dc   :  { %v126_v60 = vpop.permute.xlu1 %125 }
 0x1dd   :  { %v128_v61 = vadd.f32 %v126_v60, %v122_v58  ;;  %v129_v62 = vadd.f32 %v126_v60, %v123_v59 }
 0x1df   :  { %200 = vtanh.f32 %v128_v61 }
 0x1e0   :  { %202 = vtanh.f32 %v129_v62 }
 0x1e9   :  { %v201_v63 = vpop.eup %200 }
 0x1ea   :  { %v132_v2 = vadd.f32 1.0, %v201_v63  ;;  %v203_v3 = vpop.eup %202 }
 0x1eb   :  { %v133_v4 = vadd.f32 1.0, %v203_v3 }
 0x1ec   :  { %136 = vperm.xlu1 %190, %v132_v2  }
 0x1f0   :  { %140 = vperm.xlu1 %190, %v133_v4  }
 0x26b   :  { %v137_v11 = vpop.permute.xlu1 %136 }
 0x26c   :  { %v148_v12 = vrot.slane %v137_v11, %v147_v10 }
 0x26e   :  { %v158_v13 = vmul.f32 %v148_v12, %v328_v0 }
 0x26f   :  { %v141_v14 = vpop.permute.xlu1 %140 }
 0x270   :  { %160 = vst [vmem:[#allocation7] sm:$0xff] %v158_v13  ;;  %v155_v15 = vrot.slane %v141_v14, %v147_v10 }
 0x272   :  { %v159_v16 = vmul.f32 %v155_v15, %v330_v1 }
 0x274   :  { %161 = vst [vmem:[#allocation7 + $0x8] sm:$0xff] %v159_v16 }
 0x275   :  { %259 = shalt.err (!%p256_p6)
}
 0x276   :  { %s260_s13 = scalar_lea.hbm %s355_s2, 256 }
 0x277   :  { %p261_p7 = scmp.ne.s32.totalorder %s355_s2, %s260_s13  ;;  %p264_p8 = scmp.lt.u32.totalorder %s260_s13, %s355_s2 }
 0x279   :  { %p266_p9 = pnand %p264_p8, %p261_p7 }
 0x27b   :  { %269 = shalt.err (!%p266_p9)
}
 0x27c   :  { %173 = dma.vmem_to_hbm [thread:$0]  %s168_s9, 256, %s355_s2, [#allocation4], %s277_s19, %s277_s19, %s278_s20  }
 0x27d   :  { %274 = dma.done.wait [#allocation4], 256  }
 0x27e   :  { %275 = vsyncadd [#allocation4], 4294967040 }
 0x27f   :  { %177 = vsyncpa [#allocation3], 1 }
 0x280   :  { %178 = vsyncpa [#allocation6], 1 }
 0x281   :  { %179 = vsyncpa [#allocation4], 1 }

</bundles_post_ra>
